<compile_context>
chip_gen: v7x
topology: tpu7x:2x2x1
jax: 0.10.0
libtpu: 0.0.40
codegen_flags: <defaults>
</compile_context>

<pallas_src>
import math

import numpy as np
import jax
import jax.numpy as jnp
from jax import lax
from jax.experimental import pallas as pl
from jax.experimental.pallas import tpu as pltpu

# 48 MiB: <= v7x physical VMEM (64 MiB), generous for v5e/v6e (128 MiB).
_VMEM_LIMIT = 48 * 1024 * 1024


# --------------------------- in-kernel helpers -----------------------------

# Abramowitz & Stegun 4.4.45: acos(a) ~= sqrt(1-a)*(c0 + c1 a + c2 a^2 + c3 a^3)
# for a in [0,1], |err| <= 5e-5.  The 1/pi scale of the edge weight is folded
# directly into the coefficients (review item: shorten the Horner chain).
_EW_C3, _EW_C2, _EW_C1, _EW_C0 = (c / math.pi for c in
                                  (-0.0187293, 0.0742610, -0.2121144, 1.5707288))


def _edge_weights(cos_sim):
    """Aij = 1 - acos(clip(cos, -1, 1)) / pi  (same clamping as the torch code)."""
    c = jnp.clip(cos_sim, -1.0, 1.0)
    a = jnp.abs(c)
    p = _EW_C3 * a + _EW_C2
    p = p * a + _EW_C1
    p = p * a + _EW_C0
    r = jnp.sqrt(jnp.maximum(1.0 - a, 0.0)) * p          # acos(|c|) / pi
    # c >= 0: 1 - acos(c)/pi = 1 - r ;  c < 0: acos(c) = pi - acos(|c|) -> Aij = r
    return jnp.where(c < 0.0, r, 1.0 - r)


# ----------------- fused per-dialogue kernel (single launch) ----------------

def _dialogue_kernel(lens_ref, x_ref, w1_ref, b1_ref, w2_ref, b2_ref,
                     w3x_ref, w3g_ref, b3_ref, o_ref):
    tl = x_ref.shape[0]
    L = lens_ref[pl.program_id(0)]                      # valid rows of this dialogue

    rows = lax.broadcasted_iota(jnp.int32, (tl, tl), 0)
    cols = lax.broadcasted_iota(jnp.int32, (tl, tl), 1)
    eye_b = rows == cols
    valid = jnp.logical_and(rows < L, cols < L)
    mask = jnp.logical_and(valid, jnp.logical_not(eye_b))
    # eye on padded rows too -> padded degrees are 1 (no inf/NaN propagation);
    # padded rows never couple to valid rows, their outputs are sliced away.
    eye_f = eye_b.astype(jnp.float32)

    def message_pass(feat):
        # cosine similarity via row-normalized Gram; contraction on axis 1 of
        # BOTH operands (no transpose / relayout before the MXU push).
        sq = jnp.sum(feat * feat, axis=1, keepdims=True)
        fn = feat * lax.rsqrt(jnp.where(sq > 0.0, sq, 1.0))
        cos = lax.dot_general(fn, fn, (((1,), (1,)), ((), ())),
                              preferred_element_type=jnp.float32)   # (TL, TL)
        adj = jnp.where(mask, _edge_weights(cos), 0.0) + eye_f
        dinv = lax.rsqrt(jnp.sum(adj, axis=1, keepdims=True))       # degree
        # D^-1/2 A D^-1/2 @ feat  ==  dinv * (A @ (dinv * feat))
        return dinv * jnp.dot(adj, dinv * feat,
                              preferred_element_type=jnp.float32)

    x = x_ref[...]
    xg = jnp.dot(message_pass(x), w1_ref[...],
                 preferred_element_type=jnp.float32) + b1_ref[...]
    xg2 = jnp.dot(message_pass(xg), w2_ref[...],
                  preferred_element_type=jnp.float32) + b2_ref[...]
    # residual classifier without materializing concat([x, xg2]):
    logits = (jnp.dot(x, w3x_ref[...], preferred_element_type=jnp.float32)
              + jnp.dot(xg2, w3g_ref[...], preferred_element_type=jnp.float32)
              + b3_ref[...])
    m = jnp.max(logits, axis=1, keepdims=True)
    lse = jnp.log(jnp.sum(jnp.exp(logits - m), axis=1, keepdims=True)) + m
    o_ref[...] = logits - lse


# ------------------------------ public API ---------------------------------

def _dialogue_padding(dia_len, n, tl):
    """Static (trace-time) gather / un-pad index tables for per-dialogue slabs."""
    d = len(dia_len)
    gather = np.full((d, tl), n, dtype=np.int32)        # n -> sentinel zero row
    unpad = np.zeros((n,), dtype=np.int32)
    off = 0
    for i, L in enumerate(dia_len):
        L = int(L)
        gather[i, :L] = np.arange(off, off + L, dtype=np.int32)
        unpad[off:off + L] = i * tl + np.arange(L, dtype=np.int32)
        off += L
    assert off == n, "dia_len must sum to the number of nodes"
    return jnp.asarray(gather), jnp.asarray(unpad)


def gcn_2layers_forward(params, x, dia_len):
    """Forward pass of GCN_2Layers (use_topic=False, use_residue=True)."""
    n, f = x.shape
    h = params["w1"].shape[1]
    c = params["b3"].shape[1]
    d = len(dia_len)
    tl = max(8, ((int(max(dia_len)) + 7) // 8) * 8)     # sublane-aligned slab

    gather, unpad = _dialogue_padding(dia_len, n, tl)
    x_ext = jnp.concatenate([x.astype(jnp.float32),
                             jnp.zeros((1, f), jnp.float32)], axis=0)
    xp = jnp.take(x_ext, gather, axis=0)                # (D, TL, F), cheap (F small)
    lens = jnp.asarray(np.asarray(dia_len, dtype=np.int32))

    grid_spec = pltpu.PrefetchScalarGridSpec(
        num_scalar_prefetch=1,
        grid=(d,),
        in_specs=[
            pl.BlockSpec((None, tl, f), lambda i, lens: (i, 0, 0)),   # x slab
            pl.BlockSpec((f, h), lambda i, lens: (0, 0)),             # W1
            pl.BlockSpec((1, h), lambda i, lens: (0, 0)),             # b1
            pl.BlockSpec((h, h), lambda i, lens: (0, 0)),             # W2
            pl.BlockSpec((1, h), lambda i, lens: (0, 0)),             # b2
            pl.BlockSpec((f, c), lambda i, lens: (0, 0)),             # W3 (x part)
            pl.BlockSpec((h, c), lambda i, lens: (0, 0)),             # W3 (g part)
            pl.BlockSpec((1, c), lambda i, lens: (0, 0)),             # b3
        ],
        out_specs=pl.BlockSpec((None, tl, c), lambda i, lens: (i, 0, 0)),
    )
    out_padded = pl.pallas_call(
        _dialogue_kernel,
        out_shape=jax.ShapeDtypeStruct((d, tl, c), jnp.float32),
        grid_spec=grid_spec,
        compiler_params=pltpu.CompilerParams(
            dimension_semantics=("parallel",),          # megacore over dialogues
            vmem_limit_bytes=_VMEM_LIMIT),
    )(lens, xp, params["w1"], params["b1"], params["w2"], params["b2"],
      params["w3x"], params["w3g"], params["b3"])
    return out_padded.reshape(d * tl, c)[unpad]


# -------------------- pure-JAX reference (same math) -----------------------

def gcn_2layers_reference(params, x, dia_len):
    n = x.shape[0]
    seg = np.repeat(np.arange(len(dia_len)), np.asarray(dia_len))
    same = jnp.asarray(seg[:, None] == seg[None, :])
    eye = jnp.eye(n, dtype=jnp.float32)

    def norm_adj(feat):
        s = feat @ feat.T
        diag = jnp.diagonal(s)
        denom = jnp.sqrt(diag)[:, None] * jnp.sqrt(diag)[None, :]
        fcs = jnp.where(denom == 0.0, 0.0, s / jnp.where(denom == 0.0, 1.0, denom))
        fcs = jnp.clip(fcs, -1.0, 1.0)
        a = 1.0 - jnp.arccos(fcs) / math.pi
        adj = jnp.where(same & (eye == 0.0), a, 0.0) + eye
        dinv = adj.sum(1) ** -0.5
        return dinv[:, None] * adj * dinv[None, :]

    xg = norm_adj(x) @ x @ params["w1"] + params["b1"]
    xg2 = norm_adj(xg) @ xg @ params["w2"] + params["b2"]
    w3 = jnp.concatenate([params["w3x"], params["w3g"]], axis=0)
    logits = jnp.concatenate([x, xg2], axis=-1) @ w3 + params["b3"]
    return jax.nn.log_softmax(logits, axis=1)


# ------------------------------ param init ---------------------------------

def init_params(k1, k2, k3, lstm_hid_size, gcn_hid_dim, num_class):
    def linear_init(key, fan_in, fan_out):
        bound = 1.0 / math.sqrt(fan_in)
        kw, kb = jax.random.split(key)
        w = jax.random.uniform(kw, (fan_in, fan_out), jnp.float32, -bound, bound)
        b = jax.random.uniform(kb, (1, fan_out), jnp.float32, -bound, bound)
        return w, b

    w1, b1 = linear_init(k1, lstm_hid_size, gcn_hid_dim)
    w2, b2 = linear_init(k2, gcn_hid_dim, gcn_hid_dim)
    w3, b3 = linear_init(k3, lstm_hid_size + gcn_hid_dim, num_class)
    # W3 split once here so the residual concat([x, x_g2]) is never built.
    return {"w1": w1, "b1": b1, "w2": w2, "b2": b2,
            "w3x": w3[:lstm_hid_size], "w3g": w3[lstm_hid_size:], "b3": b3}


if __name__ == "__main__":
    lstm_hid_size = 16
    gcn_hid_dim = 16
    num_class = 6

    key = jax.random.PRNGKey(0)
    k_xs, k_xl, k1, k2, k3 = jax.random.split(key, 5)
    params = init_params(k1, k2, k3, lstm_hid_size, gcn_hid_dim, num_class)

    # Small case (includes a length-1 dialogue corner case).
    dia_len_small = [5, 3, 1]                    # N = 9 nodes, 3 dialogues
    x_small = jax.random.normal(k_xs, (sum(dia_len_small), lstm_hid_size),
                                jnp.float32)
    out_small = jax.block_until_ready(
        gcn_2layers_forward(params, x_small, dia_len_small))
    ref_small = jax.block_until_ready(
        gcn_2layers_reference(params, x_small, dia_len_small))
    assert out_small.shape == (sum(dia_len_small), num_class)
    np.testing.assert_allclose(np.asarray(out_small), np.asarray(ref_small),
                               rtol=1e-3, atol=1e-3)

    # Larger, ragged case: 4 dialogues, N = 256 -> grid=(4,) sharded across
    # TensorCores; only padded L_i x L_i adjacency blocks are ever built.
    dia_len_big = [60, 70, 50, 76]
    x_big = jax.random.normal(k_xl, (sum(dia_len_big), lstm_hid_size),
                              jnp.float32)
    out_big = jax.block_until_ready(
        gcn_2layers_forward(params, x_big, dia_len_big))
    ref_big = jax.block_until_ready(
        gcn_2layers_reference(params, x_big, dia_len_big))
    assert out_big.shape == (sum(dia_len_big), num_class)
    np.testing.assert_allclose(np.asarray(out_big), np.asarray(ref_big),
                               rtol=1e-3, atol=1e-3)

    print("KERNEL_OK")
</pallas_src>

<mosaic_0001>
module attributes {stable_mosaic.version = 11 : i64} {
  func.func @_dialogue_kernel(%arg0: i32, %arg1: memref<3xi32, #tpu.memory_space<smem>>, %arg2: memref<1x8x16xf32, #tpu.memory_space<vmem>>, %arg3: memref<16x16xf32, #tpu.memory_space<vmem>>, %arg4: memref<1x16xf32, #tpu.memory_space<vmem>>, %arg5: memref<16x16xf32, #tpu.memory_space<vmem>>, %arg6: memref<1x16xf32, #tpu.memory_space<vmem>>, %arg7: memref<16x6xf32, #tpu.memory_space<vmem>>, %arg8: memref<16x6xf32, #tpu.memory_space<vmem>>, %arg9: memref<1x6xf32, #tpu.memory_space<vmem>>, %arg10: memref<1x8x6xf32, #tpu.memory_space<vmem>>) attributes {dimension_semantics = [#tpu.dimension_semantics<parallel>], iteration_bounds = array<i64: 3>, scalar_prefetch = 1 : i64, scratch_operands = 0 : i64, tpu.core_type = #tpu.core_type<tc>, window_params = [{transform_indices = @transform_0, window_bounds = array<i64: 1, 8, 16>}, {pipeline_mode = #tpu.pipeline_mode<synchronous>, transform_indices = @transform_1, window_bounds = array<i64: 16, 16>}, {pipeline_mode = #tpu.pipeline_mode<synchronous>, transform_indices = @transform_2, window_bounds = array<i64: 1, 16>}, {pipeline_mode = #tpu.pipeline_mode<synchronous>, transform_indices = @transform_3, window_bounds = array<i64: 16, 16>}, {pipeline_mode = #tpu.pipeline_mode<synchronous>, transform_indices = @transform_4, window_bounds = array<i64: 1, 16>}, {pipeline_mode = #tpu.pipeline_mode<synchronous>, transform_indices = @transform_5, window_bounds = array<i64: 16, 6>}, {pipeline_mode = #tpu.pipeline_mode<synchronous>, transform_indices = @transform_6, window_bounds = array<i64: 16, 6>}, {pipeline_mode = #tpu.pipeline_mode<synchronous>, transform_indices = @transform_7, window_bounds = array<i64: 1, 6>}, {transform_indices = @transform_8, window_bounds = array<i64: 1, 8, 6>}]} {
    %0 = arith.index_cast %arg0 : i32 to index
    %1 = memref.load %arg1[%0] : memref<3xi32, #tpu.memory_space<smem>>
    %2 = tpu.iota {dimensions = array<i32: 0>} : vector<8x8xi32>
    %3 = tpu.iota {dimensions = array<i32: 1>} : vector<8x8xi32>
    %4 = arith.cmpi eq, %2, %3 : vector<8x8xi32>
    %5 = vector.broadcast %1 : i32 to vector<8x8xi32>
    %6 = arith.cmpi slt, %2, %5 : vector<8x8xi32>
    %7 = vector.broadcast %1 : i32 to vector<8x8xi32>
    %8 = arith.cmpi slt, %3, %7 : vector<8x8xi32>
    %9 = arith.andi %6, %8 : vector<8x8xi1>
    %cst = arith.constant dense<true> : vector<8x8xi1>
    %10 = arith.xori %4, %cst : vector<8x8xi1>
    %11 = arith.andi %9, %10 : vector<8x8xi1>
    %12 = arith.extui %4 : vector<8x8xi1> to vector<8x8xi32>
    %13 = arith.sitofp %12 : vector<8x8xi32> to vector<8x8xf32>
    %c0 = arith.constant 0 : index
    %c0_0 = arith.constant 0 : index
    %c0_1 = arith.constant 0 : index
    %14 = vector.load %arg2[%c0, %c0_0, %c0_1] : memref<1x8x16xf32, #tpu.memory_space<vmem>>, vector<1x8x16xf32>
    %15 = vector.shape_cast %14 : vector<1x8x16xf32> to vector<8x16xf32>
    %16 = arith.mulf %15, %15 : vector<8x16xf32>
    %cst_2 = arith.constant dense<0.000000e+00> : vector<8xf32>
    %17 = vector.multi_reduction <add>, %16, %cst_2 [1] : vector<8x16xf32> to vector<8xf32>
    %18 = vector.shape_cast %17 : vector<8xf32> to vector<8x1xf32>
    %cst_3 = arith.constant 0.000000e+00 : f32
    %19 = vector.broadcast %cst_3 : f32 to vector<8x1xf32>
    %20 = arith.cmpf ogt, %18, %19 : vector<8x1xf32>
    %cst_4 = arith.constant 1.000000e+00 : f32
    %21 = vector.broadcast %cst_4 : f32 to vector<8x1xf32>
    %22 = arith.select %20, %18, %21 : vector<8x1xi1>, vector<8x1xf32>
    %23 = math.rsqrt %22 : vector<8x1xf32>
    %24 = vector.broadcast %23 : vector<8x1xf32> to vector<8x16xf32>
    %25 = arith.mulf %15, %24 : vector<8x16xf32>
    %cst_5 = arith.constant dense<0.000000e+00> : vector<8x8xf32>
    %26 = tpu.matmul %25, %25, %cst_5 {dimension_numbers = #tpu.dot_dimension_numbers<[1], [1], [0], [0], [0, 0, 1, 0], [], []>} : vector<8x16xf32>, vector<8x16xf32>, vector<8x8xf32> -> vector<8x8xf32>
    %cst_6 = arith.constant -1.000000e+00 : f32
    %cst_7 = arith.constant 1.000000e+00 : f32
    %27 = vector.broadcast %cst_6 : f32 to vector<8x8xf32>
    %28 = arith.maximumf %27, %26 : vector<8x8xf32>
    %29 = vector.broadcast %cst_7 : f32 to vector<8x8xf32>
    %30 = arith.minimumf %29, %28 : vector<8x8xf32>
    %31 = math.absf %30 : vector<8x8xf32>
    %cst_8 = arith.constant -0.0059617213 : f32
    %32 = vector.broadcast %cst_8 : f32 to vector<8x8xf32>
    %33 = arith.mulf %32, %31 : vector<8x8xf32>
    %cst_9 = arith.constant 0.02363801 : f32
    %34 = vector.broadcast %cst_9 : f32 to vector<8x8xf32>
    %35 = arith.addf %33, %34 : vector<8x8xf32>
    %36 = arith.mulf %35, %31 : vector<8x8xf32>
    %cst_10 = arith.constant -0.0675181076 : f32
    %37 = vector.broadcast %cst_10 : f32 to vector<8x8xf32>
    %38 = arith.addf %36, %37 : vector<8x8xf32>
    %39 = arith.mulf %38, %31 : vector<8x8xf32>
    %cst_11 = arith.constant 0.499978513 : f32
    %40 = vector.broadcast %cst_11 : f32 to vector<8x8xf32>
    %41 = arith.addf %39, %40 : vector<8x8xf32>
    %cst_12 = arith.constant 1.000000e+00 : f32
    %42 = vector.broadcast %cst_12 : f32 to vector<8x8xf32>
    %43 = arith.subf %42, %31 : vector<8x8xf32>
    %cst_13 = arith.constant 0.000000e+00 : f32
    %44 = vector.broadcast %cst_13 : f32 to vector<8x8xf32>
    %45 = arith.maximumf %43, %44 : vector<8x8xf32>
    %46 = math.sqrt %45 : vector<8x8xf32>
    %47 = arith.mulf %46, %41 : vector<8x8xf32>
    %cst_14 = arith.constant 0.000000e+00 : f32
    %48 = vector.broadcast %cst_14 : f32 to vector<8x8xf32>
    %49 = arith.cmpf olt, %30, %48 : vector<8x8xf32>
    %cst_15 = arith.constant 1.000000e+00 : f32
    %50 = vector.broadcast %cst_15 : f32 to vector<8x8xf32>
    %51 = arith.subf %50, %47 : vector<8x8xf32>
    %52 = arith.select %49, %47, %51 : vector<8x8xi1>, vector<8x8xf32>
    %cst_16 = arith.constant 0.000000e+00 : f32
    %53 = vector.broadcast %cst_16 : f32 to vector<8x8xf32>
    %54 = arith.select %11, %52, %53 : vector<8x8xi1>, vector<8x8xf32>
    %55 = arith.addf %54, %13 : vector<8x8xf32>
    %cst_17 = arith.constant dense<0.000000e+00> : vector<8xf32>
    %56 = vector.multi_reduction <add>, %55, %cst_17 [1] : vector<8x8xf32> to vector<8xf32>
    %57 = vector.shape_cast %56 : vector<8xf32> to vector<8x1xf32>
    %58 = math.rsqrt %57 : vector<8x1xf32>
    %59 = vector.broadcast %58 : vector<8x1xf32> to vector<8x16xf32>
    %60 = arith.mulf %59, %15 : vector<8x16xf32>
    %cst_18 = arith.constant dense<0.000000e+00> : vector<8x16xf32>
    %61 = tpu.matmul %55, %60, %cst_18 {dimension_numbers = #tpu.dot_dimension_numbers<[1], [0], [0], [1], [0, 0, 1, 1], [], []>} : vector<8x8xf32>, vector<8x16xf32>, vector<8x16xf32> -> vector<8x16xf32>
    %62 = vector.broadcast %58 : vector<8x1xf32> to vector<8x16xf32>
    %63 = arith.mulf %62, %61 : vector<8x16xf32>
    %c0_19 = arith.constant 0 : index
    %c0_20 = arith.constant 0 : index
    %64 = vector.load %arg3[%c0_19, %c0_20] : memref<16x16xf32, #tpu.memory_space<vmem>>, vector<16x16xf32>
    %cst_21 = arith.constant dense<0.000000e+00> : vector<8x16xf32>
    %65 = tpu.matmul %63, %64, %cst_21 {dimension_numbers = #tpu.dot_dimension_numbers<[1], [0], [0], [1], [0, 0, 1, 1], [], []>} : vector<8x16xf32>, vector<16x16xf32>, vector<8x16xf32> -> vector<8x16xf32>
    %c0_22 = arith.constant 0 : index
    %c0_23 = arith.constant 0 : index
    %66 = vector.load %arg4[%c0_22, %c0_23] : memref<1x16xf32, #tpu.memory_space<vmem>>, vector<1x16xf32>
    %67 = vector.broadcast %66 : vector<1x16xf32> to vector<8x16xf32>
    %68 = arith.addf %65, %67 : vector<8x16xf32>
    %69 = arith.mulf %68, %68 : vector<8x16xf32>
    %cst_24 = arith.constant dense<0.000000e+00> : vector<8xf32>
    %70 = vector.multi_reduction <add>, %69, %cst_24 [1] : vector<8x16xf32> to vector<8xf32>
    %71 = vector.shape_cast %70 : vector<8xf32> to vector<8x1xf32>
    %cst_25 = arith.constant 0.000000e+00 : f32
    %72 = vector.broadcast %cst_25 : f32 to vector<8x1xf32>
    %73 = arith.cmpf ogt, %71, %72 : vector<8x1xf32>
    %cst_26 = arith.constant 1.000000e+00 : f32
    %74 = vector.broadcast %cst_26 : f32 to vector<8x1xf32>
    %75 = arith.select %73, %71, %74 : vector<8x1xi1>, vector<8x1xf32>
    %76 = math.rsqrt %75 : vector<8x1xf32>
    %77 = vector.broadcast %76 : vector<8x1xf32> to vector<8x16xf32>
    %78 = arith.mulf %68, %77 : vector<8x16xf32>
    %cst_27 = arith.constant dense<0.000000e+00> : vector<8x8xf32>
    %79 = tpu.matmul %78, %78, %cst_27 {dimension_numbers = #tpu.dot_dimension_numbers<[1], [1], [0], [0], [0, 0, 1, 0], [], []>} : vector<8x16xf32>, vector<8x16xf32>, vector<8x8xf32> -> vector<8x8xf32>
    %cst_28 = arith.constant -1.000000e+00 : f32
    %cst_29 = arith.constant 1.000000e+00 : f32
    %80 = vector.broadcast %cst_28 : f32 to vector<8x8xf32>
    %81 = arith.maximumf %80, %79 : vector<8x8xf32>
    %82 = vector.broadcast %cst_29 : f32 to vector<8x8xf32>
    %83 = arith.minimumf %82, %81 : vector<8x8xf32>
    %84 = math.absf %83 : vector<8x8xf32>
    %cst_30 = arith.constant -0.0059617213 : f32
    %85 = vector.broadcast %cst_30 : f32 to vector<8x8xf32>
    %86 = arith.mulf %85, %84 : vector<8x8xf32>
    %cst_31 = arith.constant 0.02363801 : f32
    %87 = vector.broadcast %cst_31 : f32 to vector<8x8xf32>
    %88 = arith.addf %86, %87 : vector<8x8xf32>
    %89 = arith.mulf %88, %84 : vector<8x8xf32>
    %cst_32 = arith.constant -0.0675181076 : f32
    %90 = vector.broadcast %cst_32 : f32 to vector<8x8xf32>
    %91 = arith.addf %89, %90 : vector<8x8xf32>
    %92 = arith.mulf %91, %84 : vector<8x8xf32>
    %cst_33 = arith.constant 0.499978513 : f32
    %93 = vector.broadcast %cst_33 : f32 to vector<8x8xf32>
    %94 = arith.addf %92, %93 : vector<8x8xf32>
    %cst_34 = arith.constant 1.000000e+00 : f32
    %95 = vector.broadcast %cst_34 : f32 to vector<8x8xf32>
    %96 = arith.subf %95, %84 : vector<8x8xf32>
    %cst_35 = arith.constant 0.000000e+00 : f32
    %97 = vector.broadcast %cst_35 : f32 to vector<8x8xf32>
    %98 = arith.maximumf %96, %97 : vector<8x8xf32>
    %99 = math.sqrt %98 : vector<8x8xf32>
    %100 = arith.mulf %99, %94 : vector<8x8xf32>
    %cst_36 = arith.constant 0.000000e+00 : f32
    %101 = vector.broadcast %cst_36 : f32 to vector<8x8xf32>
    %102 = arith.cmpf olt, %83, %101 : vector<8x8xf32>
    %cst_37 = arith.constant 1.000000e+00 : f32
    %103 = vector.broadcast %cst_37 : f32 to vector<8x8xf32>
    %104 = arith.subf %103, %100 : vector<8x8xf32>
    %105 = arith.select %102, %100, %104 : vector<8x8xi1>, vector<8x8xf32>
    %cst_38 = arith.constant 0.000000e+00 : f32
    %106 = vector.broadcast %cst_38 : f32 to vector<8x8xf32>
    %107 = arith.select %11, %105, %106 : vector<8x8xi1>, vector<8x8xf32>
    %108 = arith.addf %107, %13 : vector<8x8xf32>
    %cst_39 = arith.constant dense<0.000000e+00> : vector<8xf32>
    %109 = vector.multi_reduction <add>, %108, %cst_39 [1] : vector<8x8xf32> to vector<8xf32>
    %110 = vector.shape_cast %109 : vector<8xf32> to vector<8x1xf32>
    %111 = math.rsqrt %110 : vector<8x1xf32>
    %112 = vector.broadcast %111 : vector<8x1xf32> to vector<8x16xf32>
    %113 = arith.mulf %112, %68 : vector<8x16xf32>
    %cst_40 = arith.constant dense<0.000000e+00> : vector<8x16xf32>
    %114 = tpu.matmul %108, %113, %cst_40 {dimension_numbers = #tpu.dot_dimension_numbers<[1], [0], [0], [1], [0, 0, 1, 1], [], []>} : vector<8x8xf32>, vector<8x16xf32>, vector<8x16xf32> -> vector<8x16xf32>
    %115 = vector.broadcast %111 : vector<8x1xf32> to vector<8x16xf32>
    %116 = arith.mulf %115, %114 : vector<8x16xf32>
    %c0_41 = arith.constant 0 : index
    %c0_42 = arith.constant 0 : index
    %117 = vector.load %arg5[%c0_41, %c0_42] : memref<16x16xf32, #tpu.memory_space<vmem>>, vector<16x16xf32>
    %cst_43 = arith.constant dense<0.000000e+00> : vector<8x16xf32>
    %118 = tpu.matmul %116, %117, %cst_43 {dimension_numbers = #tpu.dot_dimension_numbers<[1], [0], [0], [1], [0, 0, 1, 1], [], []>} : vector<8x16xf32>, vector<16x16xf32>, vector<8x16xf32> -> vector<8x16xf32>
    %c0_44 = arith.constant 0 : index
    %c0_45 = arith.constant 0 : index
    %119 = vector.load %arg6[%c0_44, %c0_45] : memref<1x16xf32, #tpu.memory_space<vmem>>, vector<1x16xf32>
    %120 = vector.broadcast %119 : vector<1x16xf32> to vector<8x16xf32>
    %121 = arith.addf %118, %120 : vector<8x16xf32>
    %c0_46 = arith.constant 0 : index
    %c0_47 = arith.constant 0 : index
    %122 = vector.load %arg7[%c0_46, %c0_47] : memref<16x6xf32, #tpu.memory_space<vmem>>, vector<16x6xf32>
    %cst_48 = arith.constant dense<0.000000e+00> : vector<8x6xf32>
    %123 = tpu.matmul %15, %122, %cst_48 {dimension_numbers = #tpu.dot_dimension_numbers<[1], [0], [0], [1], [0, 0, 1, 1], [], []>} : vector<8x16xf32>, vector<16x6xf32>, vector<8x6xf32> -> vector<8x6xf32>
    %c0_49 = arith.constant 0 : index
    %c0_50 = arith.constant 0 : index
    %124 = vector.load %arg8[%c0_49, %c0_50] : memref<16x6xf32, #tpu.memory_space<vmem>>, vector<16x6xf32>
    %cst_51 = arith.constant dense<0.000000e+00> : vector<8x6xf32>
    %125 = tpu.matmul %121, %124, %cst_51 {dimension_numbers = #tpu.dot_dimension_numbers<[1], [0], [0], [1], [0, 0, 1, 1], [], []>} : vector<8x16xf32>, vector<16x6xf32>, vector<8x6xf32> -> vector<8x6xf32>
    %126 = arith.addf %123, %125 : vector<8x6xf32>
    %c0_52 = arith.constant 0 : index
    %c0_53 = arith.constant 0 : index
    %127 = vector.load %arg9[%c0_52, %c0_53] : memref<1x6xf32, #tpu.memory_space<vmem>>, vector<1x6xf32>
    %128 = vector.broadcast %127 : vector<1x6xf32> to vector<8x6xf32>
    %129 = arith.addf %126, %128 : vector<8x6xf32>
    %cst_54 = arith.constant dense<0xFF800000> : vector<8xf32>
    %130 = vector.multi_reduction <maximumf>, %129, %cst_54 [1] : vector<8x6xf32> to vector<8xf32>
    %131 = vector.shape_cast %130 : vector<8xf32> to vector<8x1xf32>
    %132 = vector.broadcast %131 : vector<8x1xf32> to vector<8x6xf32>
    %133 = arith.subf %129, %132 : vector<8x6xf32>
    %134 = math.exp %133 : vector<8x6xf32>
    %cst_55 = arith.constant dense<0.000000e+00> : vector<8xf32>
    %135 = vector.multi_reduction <add>, %134, %cst_55 [1] : vector<8x6xf32> to vector<8xf32>
    %136 = vector.shape_cast %135 : vector<8xf32> to vector<8x1xf32>
    %137 = math.log %136 : vector<8x1xf32>
    %138 = arith.addf %137, %131 : vector<8x1xf32>
    %139 = vector.broadcast %138 : vector<8x1xf32> to vector<8x6xf32>
    %140 = arith.subf %129, %139 : vector<8x6xf32>
    %c0_56 = arith.constant 0 : index
    %c0_57 = arith.constant 0 : index
    %c0_58 = arith.constant 0 : index
    %141 = vector.load %arg10[%c0_56, %c0_57, %c0_58] : memref<1x8x6xf32, #tpu.memory_space<vmem>>, vector<1x8x6xf32>
    %142 = vector.shape_cast %141 : vector<1x8x6xf32> to vector<8x6xf32>
    %143 = vector.shape_cast %140 : vector<8x6xf32> to vector<1x8x6xf32>
    tpu.vector_store %arg10[%c0_56, %c0_57, %c0_58], %143 {strides = array<i32>} : memref<1x8x6xf32, #tpu.memory_space<vmem>>, vector<1x8x6xf32>,
    return
  }
  func.func @transform_0(%arg0: i32, %arg1: memref<3xi32, #tpu.memory_space<smem>>) -> (i32, i32, i32) {
    %c0_i32 = arith.constant 0 : i32
    %c0_i32_0 = arith.constant 0 : i32
    %c0_i32_1 = arith.constant 0 : i32
    return %arg0, %c0_i32, %c0_i32_0 : i32, i32, i32
  }
  func.func @transform_1(%arg0: i32, %arg1: memref<3xi32, #tpu.memory_space<smem>>) -> (i32, i32) {
    %c0_i32 = arith.constant 0 : i32
    %c0_i32_0 = arith.constant 0 : i32
    %c0_i32_1 = arith.constant 0 : i32
    return %c0_i32, %c0_i32_0 : i32, i32
  }
  func.func @transform_2(%arg0: i32, %arg1: memref<3xi32, #tpu.memory_space<smem>>) -> (i32, i32) {
    %c0_i32 = arith.constant 0 : i32
    %c0_i32_0 = arith.constant 0 : i32
    %c0_i32_1 = arith.constant 0 : i32
    return %c0_i32, %c0_i32_0 : i32, i32
  }
  func.func @transform_3(%arg0: i32, %arg1: memref<3xi32, #tpu.memory_space<smem>>) -> (i32, i32) {
    %c0_i32 = arith.constant 0 : i32
    %c0_i32_0 = arith.constant 0 : i32
    %c0_i32_1 = arith.constant 0 : i32
    return %c0_i32, %c0_i32_0 : i32, i32
  }
  func.func @transform_4(%arg0: i32, %arg1: memref<3xi32, #tpu.memory_space<smem>>) -> (i32, i32) {
    %c0_i32 = arith.constant 0 : i32
    %c0_i32_0 = arith.constant 0 : i32
    %c0_i32_1 = arith.constant 0 : i32
    return %c0_i32, %c0_i32_0 : i32, i32
  }
  func.func @transform_5(%arg0: i32, %arg1: memref<3xi32, #tpu.memory_space<smem>>) -> (i32, i32) {
    %c0_i32 = arith.constant 0 : i32
    %c0_i32_0 = arith.constant 0 : i32
    %c0_i32_1 = arith.constant 0 : i32
    return %c0_i32, %c0_i32_0 : i32, i32
  }
  func.func @transform_6(%arg0: i32, %arg1: memref<3xi32, #tpu.memory_space<smem>>) -> (i32, i32) {
    %c0_i32 = arith.constant 0 : i32
    %c0_i32_0 = arith.constant 0 : i32
    %c0_i32_1 = arith.constant 0 : i32
    return %c0_i32, %c0_i32_0 : i32, i32
  }
  func.func @transform_7(%arg0: i32, %arg1: memref<3xi32, #tpu.memory_space<smem>>) -> (i32, i32) {
    %c0_i32 = arith.constant 0 : i32
    %c0_i32_0 = arith.constant 0 : i32
    %c0_i32_1 = arith.constant 0 : i32
    return %c0_i32, %c0_i32_0 : i32, i32
  }
  func.func @transform_8(%arg0: i32, %arg1: memref<3xi32, #tpu.memory_space<smem>>) -> (i32, i32, i32) {
    %c0_i32 = arith.constant 0 : i32
    %c0_i32_0 = arith.constant 0 : i32
    %c0_i32_1 = arith.constant 0 : i32
    return %arg0, %c0_i32, %c0_i32_0 : i32, i32, i32
  }
}

</mosaic_0001>

<bundles_post_ra>
// kernel: tpu_custom_call.1
= control target key start
LH: loop header
LB: loop body
LE: loop exit
PB: predicated region body
PF: predicated region fallthrough
CT: control target
= control target key end

     0   :  { %s1706_s0 = inlined_call_operand.vmem [shape: s32[3], index: 0, kind: input, shape index: {}]   ;;  %s1707_s1 = inlined_call_operand.vmem [shape: f32[3,8,16], index: 1, kind: input, shape index: {}]   ;;  %s1708_s2 = inlined_call_operand.vmem [shape: f32[16,16], index: 2, kind: input, shape index: {}]   ;;  %s1709_s3 = inlined_call_operand.vmem [shape: f32[1,16], index: 3, kind: input, shape index: {}]   ;;  %s1710_s4 = inlined_call_operand.vmem [shape: f32[16,16], index: 4, kind: input, shape index: {}]   ;;  %s1711_s5 = inlined_call_operand.hbm [shape: f32[1,16], index: 5, kind: input, shape index: {}]   ;;  %s1712_s6 = inlined_call_operand.vmem [shape: f32[16,6], index: 6, kind: input, shape index: {}]   ;;  %s1713_s7 = inlined_call_operand.vmem [shape: f32[16,6], index: 7, kind: input, shape index: {}]   ;;  %s1714_s8 = inlined_call_operand.vmem [shape: f32[1,6], index: 8, kind: input, shape index: {}]   ;;  %s1715_s9 = inlined_call_operand.hbm [shape: f32[3,8,6], index: 9, kind: output, shape index: {}]  }
   0x1   :  { %s14_s11 = sshll.u32 %s1706_s0, 4  ;;  %s15_s11 = int_to_ptr.vmem [resolvable:$true] %s14_s11 }
   0x2   :  { %s1307_s12 = scalar_lea.vmem %s15_s11, 16  ;;  %p1312_p1 = scmp.lt.s32.totalorder %s15_s11, %s15_s11 }
   0x3   :  { %p1308_p0 = scmp.ne.s32.totalorder %s15_s11, %s1307_s12  ;;  %p1313_p2 = scmp.lt.s32.totalorder %s1307_s12, %s1307_s12 }
   0x5   :  { %p1314_p3 = por %p1313_p2, %p1312_p1 }
   0x7   :  { %p1315_p4 = pnand %p1314_p3, %p1308_p0 }
   0x9   :  { %1318 = shalt.err (!%p1315_p4)  }
   0xa   :  { %s1417_s13 = smov [#allocation3]  }
   0xb   :  { %17 = dma.vmem_to_smem %s15_s11, 16, %s1417_s13, [#allocation2] }
   0xc   :  { %1391 = dma.done.wait [#allocation2], 16 }
   0xd   :  { %1392 = vsyncadd [#allocation2], 4294967280 }
   0xe   :  { %19 = sfence }
   0xf   :  { %20 = vsyncpa [#allocation5], 0 }
  0x10   :  { %21 = vsyncpa [#allocation6], 0 }
  0x11   :  { %23 = vsyncpa [#allocation6 + $0x1], 0  ;;  %s1477_s14 = smov 0   ;;  %s1479_s15 = smov 0  }
  0x12   :  { %s1481_s0 = smov 0   ;;  %s1483_s16 = smov 0  }
  0x13 LB: > { %s1498_s17 = sadd.s32 4294967295, %s1415_s16   ;;  %s1128_s18 = sadd.s32 4294967294, %s1415_s16   ;;  %s1415_s16 = sphi %s1483_s16, %s1733_s16   ;;  %s1411_s0 = sphi %s1481_s0, %s1732_s0   ;;  %s1407_s15 = sphi %s1479_s15, %s1731_s15   ;;  %s1403_s14 = sphi %s1477_s14, %s1730_s14  }
  0x14   : > { %s1502_s19 = sadd.s32 1, %s1415_s16   ;;  %s209_s20 = sadd.s32 1, %s1411_s0 }
  0x15   : > { %s206_s21 = ssub.s32 %s1415_s16, %s1502_s19  ;;  %p219_p5 = scmp.ne.s32.totalorder %s1411_s0, %s1407_s15 }
  0x16   : > { %p207_p6 = scmp.eq.s32.totalorder %s206_s21, 0  ;;  %p220_p7 = scmp.eq.s32.totalorder %s1498_s17, 2 }
  0x17   : > { %p225_p8 = scmp.ne.s32.totalorder %s1407_s15, %s1403_s14  ;;  %p226_p9 = scmp.eq.s32.totalorder %s1128_s18, 2 }
  0x18   : > { %s1513_s22 = scalar_select %p207_p6, %s1411_s0, %s209_s20  }
  0x19   : > { %p1515_p10 = por %p220_p7, %p219_p5  ;;  %p1519_p11 = por %p226_p9, %p225_p8 }
  0x1a   : > { %p1129_p12 = scmp.ge.s32.totalorder %s1415_s16, 1  ;;  %p233_p13 = scmp.lt.s32.totalorder %s1415_s16, 4 }
  0x1b   : > { %s1719_s23 = scalar_select %p1515_p10, 1, 0 }
  0x1c   : > { %s1720_s24 = scalar_select %p1519_p11, 1, 0 }
  0x1d   : > { %p1716_p0 = scmp.eq.s32.totalorder %s1498_s17, 0  ;;  %p1526_p1 = pnand %p1129_p12, %p233_p13 }
  0x1e   : > { %s1418_s26 = smov [#allocation4]   ;;  %s1319_s10 = scalar_lea.hbm %s1711_s5, 16 }
  0x1f   : > { %s1721_s25 = scalar_select %p1526_p1, 1, 0 }
  0x20   : > { %s255_s27 = sshll.u32 %s1418_s26, 4  ;;  %p1242_p2 = pneg %p1526_p1  ;;  %s256_s27 = int_to_ptr.vmem [resolvable:$true] %s255_s27 }
  0x21   : > { %p1320_p4 = scmp.ne.s32.totalorder %s1711_s5, %s1319_s10  ;;  %p1326_p8 = scmp.lt.u32.totalorder %s1319_s10, %s1711_s5 }
  0x22   : > { %p1534_p3 = pnand %p1716_p0, %p1242_p2 }
  0x24   : > { %p1321_p5 = pneg %p1534_p3 }
  0x26   : > { %p1322_p6 = pnand %p1321_p5, %p1320_p4 }
  0x28   : > { %p1323_p7 = pneg %p1322_p6 }
  0x2a   : > { %p1328_p9 = pnand %p1326_p8, %p1323_p7 }
  0x2c   : > { %1331 = shalt.err (!%p1328_p9)
}
  0x2d   : > { %s1332_s20 = scalar_lea.vmem %s256_s27, 16  ;;  %s1339_s21 = scalar_lea.vmem %s256_s27, 32 }
  0x2e   : > { %p1333_p12 = scmp.ne.s32.totalorder %s256_s27, %s1332_s20  ;;  %p1340_p0 = scmp.lt.s32.totalorder %s256_s27, %s256_s27 }
  0x2f   : > { %p1341_p11 = scmp.lt.s32.totalorder %s1339_s21, %s1332_s20 }
  0x30   : > { %p1335_p13 = pnand %p1333_p12, %p1321_p5 }
  0x31   : > { %p1342_p10 = por %p1341_p11, %p1340_p0 }
  0x32   : > { %p1336_p2 = pneg %p1335_p13 }
  0x34   : > { %p1343_p1 = pnand %p1342_p10, %p1336_p2 }
  0x36   : > { %1346 = shalt.err (!%p1343_p1)
}
  0x37   : > { %1245 = dma.hbm_to_vmem [thread:$0]  (!%p1534_p3), %s1711_s5, 16, %s256_s27, [#allocation5]  }
  0x38   : > { %p1723_p4 = scmp.ne.s32.totalorder %s1721_s25, 0 }
  0x39   : > { %p1724_p6 = scmp.eq.s32.totalorder (!%p1723_p4), %s1498_s17, 0 }
  0x3a   : > { %284 = sbr.rel (%p1723_p4) target bundleno = 2603 (0xa2b), region = 52 }
  0x41   : > { %1394 = dma.done.wait (%p1724_p6), [#allocation5], 16   ;;  %p1725_p5 = pmov %p1724_p6 }
  0x42   : > { %p317_p11 = scmp.lt.s32.totalorder %s1498_s17, 2  ;;  %vm337_vm0 = vcmask 130048   ;;  %v1419_v3 = vmov 0.0   ;;  %vm1420_vm1 = vmmov 0   ;;  %s321_s25 = sld [smem:[#allocation3 + %s1498_s17]]  ;;  %v322_v17 = vlaneseq  ;;  %v522_v41 = vld [vmem:[%s1708_s2] sm:$0xff] }
  0x43   : > { %1396 = vsyncadd (%p1725_p5), [#allocation5], 4294967280  ;;  %1176 = vmatprep.subr.mxu0 %v1419_v3  ;;  %1181 = vmatprep.subr.mxu1 %v1419_v3  ;;  %vm1421_vm7 = vmmov 1   ;;  %vm442_vm13 = vcmask 64512   ;;  %v1422_v40 = vmov 0.0|0.0   ;;  %v523_v42 = vld [vmem:[%s1708_s2 + $0x8] sm:$0xff] }
  0x44   : > { %s318_s30 = scalar_select %p317_p11, %s1498_s17, 2  ;;  %1178 = vmatprep.mubr.msk.f32.mxu0 %vm1420_vm1, %v1419_v3  ;;  %1183 = vmatprep.mubr.msk.f32.mxu1 %vm1420_vm1, %v1419_v3  ;;  %v323_v19 = vshrl.u32 %v322_v17, 7  ;;  %v325_v20 = vand.u32 127, %v322_v17  ;;  %v1225_v43 = vpack.c.bf16 %v523_v42, %v522_v41  ;;  %v1141_v47 = vld [vmem:[%s1709_s3] ss:$0 sm:$0xff]  ;;  %v873_v30 = vld [vmem:[%s1713_s7 + $0x8] sm:$0xff] }
  0x45   : > { %s1153_s11 = sshll.u32 %s1498_s17, 7  ;;  %p1728_p0 = scmp.ne.s32.totalorder %s1719_s23, 0 }
  0x46   : > { %s1135_s10 = sshll.u32 %s318_s30, 3  ;;  %vm326_vm3 = vcmp.eq.s32.totalorder %v323_v19, %v325_v20  ;;  %s314_s30 = sand.u32 1, %s1407_s15  }
  0x47   : > { %s320_s12 = scalar_lea.vmem %s1707_s1, %s1135_s10  ;;  %vm331_vm8 = vmxor %vm326_vm3, %vm1421_vm7  ;;  %v1590_v32 = vsel %vm326_vm3, 1.0, %v1419_v3  ;;  %s1134_s10 = sshll.u32 %s314_s30, 3 }
  0x48   : > { %v1565_v0 = vld [vmem:[%s320_s12] sm:$0xff]  ;;  %v327_v21 = vstv %s321_s25  ;;  %s316_s28 = scalar_lea.vmem [#allocation7], %s1134_s10  ;;  %s1663_s13 = scalar_lea.hbm %s1715_s9, %s1153_s11 }
  0x49   : > { %v336_v1 = vmul.f32 %v1565_v0, %v1565_v0  ;;  %vm328_vm4 = vcmp.lt.s32.totalorder %v323_v19, %v327_v21  ;;  %vm329_vm5 = vcmp.lt.s32.totalorder %v325_v20, %v327_v21  ;;  %v788_v21 = vld [vmem:[%s1710_s4] sm:$0xff]  ;;  %s1057_s12 = sshll.u32 %s316_s28, 4  ;;  %s1044_s18 = scalar_lea.sflag [#allocation6], %s314_s30  ;;  %s1665_s12 = int_to_ptr.vmem [resolvable:$true] %s1057_s12 }
  0x4a   : > { %vm330_vm10 = vmand %vm328_vm4, %vm329_vm5  ;;  %s1347_s20 = scalar_lea.vmem %s1665_s12, 128  ;;  %s1423_s17 = smov [#allocation7]  }
  0x4b   : > { %v338_v2 = vsel %vm337_vm0, %v336_v1, 0.0  ;;  %vm1584_vm11 = vmand %vm330_vm10, %vm331_vm8  ;;  %p1348_p10 = scmp.ne.s32.totalorder %s1665_s12, %s1347_s20  ;;  %s1351_s21 = sshll.u32 %s1423_s17, 4  ;;  %s1352_s21 = int_to_ptr.vmem [resolvable:$false] %s1351_s21 }
  0x4c   : > { %339 = vadd.xlane.f32.xlu0 %v338_v2  ;;  %s1353_s26 = scalar_lea.vmem %s1352_s21, 256  ;;  %p1354_p7 = scmp.lt.s32.totalorder %s1665_s12, %s1352_s21 }
  0x4d   : > { %p1349_p1 = pnand %p1348_p10, %p1728_p0  ;;  %p1355_p8 = scmp.lt.s32.totalorder %s1353_s26, %s1347_s20 }
  0x4f   : > { %p1350_p3 = pneg %p1349_p1  ;;  %p1356_p9 = por %p1355_p8, %p1354_p7 }
  0x51   : > { %p1357_p12 = pnand %p1356_p9, %p1350_p3 }
  0xd9   : > { %v340_v4 = vpop.xlane.xlu0 %339 }
  0xda   : > { %vm341_vm2 = vcmp.gt.f32.partialorder %v340_v4, 0.0 }
  0xdb   : > { %v342_v5 = vsel %vm341_vm2, %v340_v4, 1.0 }
  0xdc   : > { %1291 = vrsqrt.f32 %v342_v5 }
  0xe6   : > { %v1292_v6 = vpop.eup %1291 }
  0xe7   : > { %v344_v7 = vmul.f32 %v1292_v6, %v1565_v0 }
  0xe9   : > { %1177 = vmatpush3.xpose.msk.msra.mxu0 %vm337_vm0, %v344_v7 }
  0xea   : > { %1193 = vmatprep.subr.mxu0 %v1419_v3 }
  0xec   : > { %1179 = vmatmul.mubr.msk.f32.vlgmr.msra.gmra.mrb[0].mxu0 %vm337_vm0, %v344_v7 }
  0xed   : > { %1195 = vmatprep.mubr.msk.f32.mxu0 %vm1420_vm1, %v1419_v3 }
 0x1bf   : > { %v414_v8 = vpop.f32.mrb[0].mxu0 }
 0x1c0   : > { %v1139_v9 = vclamps-f32 %v414_v8, 1.0  ;;  %v1180_v10 = vpop.f32.mrb[1].mxu0 }
 0x1c2   : > { %v420_v11 = vand.u32 2147483647, %v1139_v9  ;;  %vm437_vm12 = vcmp.lt.f32.partialorder %v1139_v9, 0.0 }
 0x1c4   : > { %v421_v12 = vmul.f32 -0.0059617213, %v420_v11  ;;  %v427_v13 = vsub.f32 1.0, %v420_v11 }
 0x1c6   : > { %v422_v14 = vadd.f32 0.02363801, %v421_v12  ;;  %v428_v15 = vmax.f32 %v427_v13, 0.0 }
 0x1c8   : > { %1293 = vrsqrt.f32 %v428_v15  ;;  %v423_v16 = vmul.f32 %v422_v14, %v420_v11  ;;  %vm431_vm6 = vcmp.eq.f32.partialorder %v428_v15, inf  ;;  %v434_v25 = vand.u32 2147483648, %v428_v15 }
 0x1c9   : > { %vm433_vm9 = vcmp.eq.f32.partialorder %v428_v15, 0.0 }
 0x1ca   : > { %v424_v18 = vadd.f32 -0.06751811, %v423_v16 }
 0x1cc   : > { %v425_v22 = vmul.f32 %v424_v18, %v420_v11 }
 0x1ce   : > { %v426_v26 = vadd.f32 0.4999785, %v425_v22  ;;  %v789_v22 = vld [vmem:[%s1710_s4 + $0x8] sm:$0xff] }
 0x1d2   : > { %v1294_v23 = vpop.eup %1293 }
 0x1d3   : > { %v430_v24 = vmul.f32 %v1294_v23, %v428_v15  ;;  %v1228_v23 = vpack.c.bf16 %v789_v22, %v788_v21 }
 0x1d5   : > { %v432_v27 = vsel %vm431_vm6, %v428_v15, %v430_v24 }
 0x1d6   : > { %v435_v28 = vsel %vm433_vm9, %v434_v25, %v432_v27  ;;  %v870_v27 = vld [vmem:[%s1712_s6] sm:$0xff] }
 0x1d7   : > { %v436_v29 = vmul.f32 %v435_v28, %v426_v26  ;;  %v871_v28 = vld [vmem:[%s1712_s6 + $0x8] sm:$0xff] }
 0x1d9   : > { %v438_v31 = vsub.f32 1.0, %v436_v29 }
 0x1db   : > { %v439_v33 = vsel %vm437_vm12, %v436_v29, %v438_v31  ;;  %v872_v29 = vld [vmem:[%s1713_s7] sm:$0xff]  ;;  %v1234_v31 = vpack.c.bf16 %v871_v28, %v870_v27 }
 0x1dc   : > { %v440_v34 = vsel %vm1584_vm11, %v439_v33, 0.0 }
 0x1dd   : > { %v441_v35 = vadd.f32 %v1590_v32, %v440_v34 }
 0x1df   : > { %v443_v36 = vsel %vm442_vm13, %v441_v35, 0.0 }
 0x1e0   : > { %444 = vadd.xlane.f32.xlu0 %v443_v36 }
 0x26d   : > { %v445_v37 = vpop.xlane.xlu0 %444 }
 0x26e   : > { %1295 = vrsqrt.f32 %v445_v37 }
 0x278   : > { %v1296_v38 = vpop.eup %1295 }
 0x279   : > { %v447_v39 = vmul.f32 %v1296_v38, %v1565_v0 }
 0x27b   : > { %1182 = vmatpush3.msra.mxu1 %v447_v39  ;;  %v1151_v39 = vld [vmem:[%s1714_s8] ss:$0 sm:$0xff] }
 0x27c   : > { %1184 = vmatmul.mubr.msk.f32.vlgmr.msra.gmra.mrb[0].mxu1 %vm442_vm13, %v441_v35  ;;  %1224 = vmatprep.subr.bf16.mxu1 %v1422_v40 }
 0x27d   : > { %1190 = vmatprep.mubr.msk.f32.mxu1 %vm1420_vm1, %v1419_v3  ;;  %1226 = vmatpush3.bf16.msra.mxu1 %v1225_v43 }
 0x27e   : > { %1198 = vmatprep.subr.mxu1 %v1419_v3 }
 0x34f   : > { %v517_v44 = vpop.f32.mrb[0].mxu1 }
 0x350   : > { %v521_v45 = vmul.f32 %v1296_v38, %v517_v44  ;;  %v1185_v46 = vpop.f32.mrb[1].mxu1 }
 0x352   : > { %1191 = vmatmul.mubr.msk.f32.vlgmr.msra.gmra.mrb[2].mxu1 %vm337_vm0, %v521_v45 }
 0x353   : > { %1200 = vmatprep.mubr.msk.f32.mxu1 %vm1420_vm1, %v1419_v3 }
 0x425   : > { %v600_v48 = vpop.f32.mrb[2].mxu1 }
 0x426   : > { %v601_v49 = vadd.f32 %v1141_v47, %v600_v48  ;;  %v1192_v50 = vpop.f32.mrb[3].mxu1 }
 0x428   : > { %v604_v51 = vmul.f32 %v601_v49, %v601_v49 }
 0x42a   : > { %v605_v52 = vsel %vm337_vm0, %v604_v51, 0.0 }
 0x42b   : > { %606 = vadd.xlane.f32.xlu1 %v605_v52 }
 0x4b8   : > { %v607_v53 = vpop.xlane.xlu1 %606 }
 0x4b9   : > { %vm608_vm14 = vcmp.gt.f32.partialorder %v607_v53, 0.0 }
 0x4ba   : > { %v609_v54 = vsel %vm608_vm14, %v607_v53, 1.0 }
 0x4bb   : > { %1297 = vrsqrt.f32 %v609_v54 }
 0x4c5   : > { %v1298_v55 = vpop.eup %1297 }
 0x4c6   : > { %v611_v56 = vmul.f32 %v1298_v55, %v601_v49 }
 0x4c8   : > { %1194 = vmatpush3.xpose.msk.msra.mxu0 %vm337_vm0, %v611_v56 }
 0x4c9   : > { %1227 = vmatprep.subr.bf16.mxu0 %v1422_v40 }
 0x4cb   : > { %1196 = vmatmul.mubr.msk.f32.vlgmr.msra.gmra.mrb[2].mxu0 %vm337_vm0, %v611_v56 }
 0x4cc   : > { %1207 = vmatprep.mubr.msk.f32.mxu0 %vm1420_vm1, %v1419_v3  ;;  %1229 = vmatpush3.bf16.msra.mxu0 %v1228_v23 }
 0x4cd   : > { %1233 = vmatprep.subr.bf16.mxu0 %v1422_v40 }
 0x59e   : > { %v681_v57 = vpop.f32.mrb[2].mxu0 }
 0x59f   : > { %v1145_v58 = vclamps-f32 %v681_v57, 1.0  ;;  %v1197_v59 = vpop.f32.mrb[3].mxu0 }
 0x5a1   : > { %v687_v60 = vand.u32 2147483647, %v1145_v58  ;;  %vm704_vm3 = vcmp.lt.f32.partialorder %v1145_v58, 0.0 }
 0x5a3   : > { %v688_v61 = vmul.f32 -0.0059617213, %v687_v60  ;;  %v694_v62 = vsub.f32 1.0, %v687_v60 }
 0x5a5   : > { %v689_v63 = vadd.f32 0.02363801, %v688_v61  ;;  %v695_v1 = vmax.f32 %v694_v62, 0.0 }
 0x5a7   : > { %1299 = vrsqrt.f32 %v695_v1  ;;  %v690_v2 = vmul.f32 %v689_v63, %v687_v60  ;;  %vm698_vm15 = vcmp.eq.f32.partialorder %v695_v1, inf  ;;  %v701_v8 = vand.u32 2147483648, %v695_v1 }
 0x5a8   : > { %vm700_vm2 = vcmp.eq.f32.partialorder %v695_v1, 0.0 }
 0x5a9   : > { %v691_v4 = vadd.f32 -0.06751811, %v690_v2 }
 0x5ab   : > { %v692_v5 = vmul.f32 %v691_v4, %v687_v60 }
 0x5ad   : > { %v693_v9 = vadd.f32 0.4999785, %v692_v5 }
 0x5b1   : > { %v1300_v6 = vpop.eup %1299 }
 0x5b2   : > { %v697_v7 = vmul.f32 %v1300_v6, %v695_v1 }
 0x5b4   : > { %v699_v10 = vsel %vm698_vm15, %v695_v1, %v697_v7 }
 0x5b5   : > { %v702_v11 = vsel %vm700_vm2, %v701_v8, %v699_v10 }
 0x5b6   : > { %v703_v12 = vmul.f32 %v702_v11, %v693_v9 }
 0x5b8   : > { %v705_v13 = vsub.f32 1.0, %v703_v12 }
 0x5ba   : > { %v706_v14 = vsel %vm704_vm3, %v703_v12, %v705_v13 }
 0x5bb   : > { %v707_v15 = vsel %vm1584_vm11, %v706_v14, 0.0 }
 0x5bc   : > { %v708_v16 = vadd.f32 %v1590_v32, %v707_v15  ;;  %v1231_v32 = vpack.c.bf16 %v873_v30, %v872_v29 }
 0x5be   : > { %v709_v17 = vsel %vm442_vm13, %v708_v16, 0.0 }
 0x5bf   : > { %710 = vadd.xlane.f32.xlu1 %v709_v17 }
 0x64c   : > { %v711_v18 = vpop.xlane.xlu1 %710 }
 0x64d   : > { %1301 = vrsqrt.f32 %v711_v18 }
 0x657   : > { %v1302_v19 = vpop.eup %1301 }
 0x658   : > { %v713_v20 = vmul.f32 %v1302_v19, %v601_v49 }
 0x65a   : > { %1199 = vmatpush3.msra.mxu1 %v713_v20 }
 0x65b   : > { %1201 = vmatmul.mubr.msk.f32.vlgmr.msra.gmra.mrb[4].mxu1 %vm442_vm13, %v708_v16  ;;  %1230 = vmatprep.subr.bf16.mxu1 %v1422_v40 }
 0x65c   : > { %1214 = vmatprep.mubr.msk.f32.mxu1 %vm1420_vm1, %v1419_v3  ;;  %1232 = vmatpush3.bf16.msra.mxu1 %v1231_v32 }
 0x72e   : > { %v783_v24 = vpop.f32.mrb[4].mxu1 }
 0x72f   : > { %v787_v25 = vmul.f32 %v1302_v19, %v783_v24  ;;  %v1202_v26 = vpop.f32.mrb[5].mxu1 }
 0x731   : > { %1208 = vmatmul.mubr.msk.f32.vlgmr.msra.gmra.mrb[4].mxu0 %vm337_vm0, %v787_v25 }
 0x732   : > { %1221 = vmatprep.mubr.msk.f32.mxu0 %vm1420_vm1, %v1419_v3  ;;  %1235 = vmatpush3.bf16.msra.mxu0 %v1234_v31  ;;  %v1147_v3 = vld [vmem:[#allocation4] ss:$0 sm:$0xff]  ;;  %vm1028_vm1 = vcmask 48128  }
 0x735   : > { %1222 = vmatmul.mubr.msk.f32.vlgmr.msra.gmra.mrb[6].mxu0 %vm337_vm0, %v1565_v0 }
 0x804   : > { %v866_v33 = vpop.f32.mrb[4].mxu0 }
 0x805   : > { %v867_v34 = vadd.f32 %v1147_v3, %v866_v33  ;;  %v1209_v35 = vpop.f32.mrb[5].mxu0 }
 0x807   : > { %1215 = vmatmul.mubr.msk.f32.vlgmr.msra.gmra.mrb[6].mxu1 %vm337_vm0, %v867_v34 }
 0x808   : > { %v1016_v36 = vpop.f32.mrb[6].mxu0 }
 0x809   : > { %v1223_v37 = vpop.f32.mrb[7].mxu0 }
 0x8da   : > { %v943_v38 = vpop.f32.mrb[6].mxu1 }
 0x8db   : > { %v1017_v40 = vadd.f32 %v1016_v36, %v943_v38  ;;  %v1216_v41 = vpop.f32.mrb[7].mxu1 }
 0x8dd   : > { %v1027_v42 = vadd.f32 %v1151_v39, %v1017_v40 }
 0x8df   : > { %v1029_v0 = vsel %vm1028_vm1, %v1027_v42, -inf }
 0x8e0   : > { %1030 = vmax.xlane.f32.xlu0 %v1029_v0 }
 0x96d   : > { %v1031_v43 = vpop.xlane.xlu0 %1030 }
 0x96e   : > { %v1032_v44 = vsub.f32 %v1027_v42, %v1031_v43 }
 0x970   : > { %v1033_v45 = vmul.f32 1.442695, %v1032_v44 }
 0x972   : > { %1303 = vpow2.f32 %v1033_v45 }
 0x97c   : > { %v1304_v46 = vpop.eup %1303 }
 0x97d   : > { %v1035_v47 = vsel %vm1028_vm1, %v1304_v46, 0.0 }
 0x97e   : > { %1036 = vadd.xlane.f32.xlu1 %v1035_v47 }
 0xa0b   : > { %v1037_v48 = vpop.xlane.xlu1 %1036 }
 0xa0c   : > { %1305 = vlog2.f32 %v1037_v48 }
 0xa16   : > { %v1306_v49 = vpop.eup %1305 }
 0xa17   : > { %v1039_v50 = vmul.f32 0.6931472, %v1306_v49 }
 0xa19   : > { %v1040_v51 = vadd.f32 %v1039_v50, %v1031_v43 }
 0xa1b   : > { %v1041_v52 = vsub.f32 %v1027_v42, %v1040_v51 }
 0xa1d   : > { %1042 = vst.msk [vmem:[%s316_s28] sm:$0xff] %vm1028_vm1, %v1041_v52 }
 0xa1e   : > { %1360 = shalt.err (!%p1357_p12)
}
 0xa1f   : > { %s1361_s29 = scalar_lea.hbm %s1663_s13, 128  ;;  %s1365_s11 = scalar_lea.hbm %s1715_s9, 384 }
 0xa20   : > { %p1362_p13 = scmp.ne.s32.totalorder %s1663_s13, %s1361_s29  ;;  %p1366_p6 = scmp.lt.u32.totalorder %s1663_s13, %s1715_s9 }
 0xa21   : > { %p1367_p5 = scmp.lt.u32.totalorder %s1365_s11, %s1361_s29  ;;  %p1369_p10 = scmp.lt.u32.totalorder %s1361_s29, %s1663_s13 }
 0xa22   : > { %p1363_p2 = pnand %p1362_p13, %p1728_p0 }
 0xa23   : > { %p1368_p11 = por %p1367_p5, %p1366_p6 }
 0xa24   : > { %p1364_p4 = pneg %p1363_p2 }
 0xa25   : > { %p1370_p1 = por %p1369_p10, %p1368_p11 }
 0xa27   : > { %p1371_p3 = pnand %p1370_p1, %p1364_p4 }
 0xa29   : > { %1374 = shalt.err (!%p1371_p3)
}
 0xa2a   : > { %1240 = dma.vmem_to_hbm [thread:$0]  (%p1728_p0), %s1665_s12, 128, %s1663_s13, %s1044_s18  }
 0xa2b PF: > { %p1252_p7 = scmp.ge.s32.totalorder %s1415_s16, 2  ;;  %s1069_s27 = sand.u32 1, %s1403_s14  }
 0xa2c   : > { %p1729_p8 = scmp.ne.s32.totalorder %s1720_s24, 0  ;;  %s1070_s20 = scalar_lea.sflag [#allocation6], %s1069_s27 }
 0xa2e   : > { %p1247_p9 = pnand %p1252_p7, %p1729_p8 }
 0xa30   : > { %1398 = dma.done.wait (!%p1247_p9), %s1070_s20, 128  }
 0xa31   : > { %1400 = vsyncadd (!%p1247_p9), %s1070_s20, 4294967168  ;;  %p26_p12 = scmp.ge.s32.totalorder %s1502_s19, 5   ;;  %s1730_s14 = smov %s1407_s15 }
 0xa32   : > { %s1731_s15 = smov %s1411_s0  ;;  %s1732_s0 = smov %s1513_s22 }
 0xa33   : > { %s1733_s16 = smov %s1502_s19  ;;  %28 = sbr.rel (!%p26_p12) target bundleno = 19 (0x13), region = 92 }
 0xa3a   :  { %1075 = vsyncpa [#allocation5], 1 }
 0xa3b   :  { %1077 = vsyncpa [#allocation5 + $0x1], 1 }
 0xa3c   :  { %1078 = vsyncpa [#allocation6], 1 }
 0xa3d   :  { %1080 = vsyncpa [#allocation6 + $0x1], 1 }

</bundles_post_ra>
